<compile_context>
chip_gen: v6e
topology: v6e:2x2x1
jax: 0.10.0
libtpu: 0.0.40
codegen_flags: <defaults>
</compile_context>

<pallas_src>
import functools

import jax
import jax.numpy as jnp
from jax.experimental import pallas as pl
from jax.experimental.pallas import tpu as pltpu


def _single_layer_kernel(x_ref, scale_ref, bias_ref, w_ref, o_ref,
                         buf_ref, col_ref, *, H, W, PAD):
    # x_ref:     (1, C, H*W)            one batch element, channels on sublanes
    # scale_ref: (C, 1)                 fused BN scale  = gamma / sqrt(var + eps)
    # bias_ref:  (C, 1)                 fused BN bias   = beta  - mean * scale
    # w_ref:     (G, 9*C)               conv weight, K index = (kh*3+kw)*C + c
    # o_ref:     (1, C+G, H*W)          rows [0,C) = x passthrough, rows [C,C+G) = conv
    # buf_ref:   (C, H*W + 2*PAD)       flat zero-bordered relu(bn(x))   (VMEM scratch)
    # col_ref:   (9*C, H*W)             im2col matrix                    (VMEM scratch)
    C = x_ref.shape[1]
    G = w_ref.shape[0]
    HW = H * W

    x = x_ref[0]                                              # (C, HW)

    # BatchNorm (pre-fused scale/bias) + ReLU on the VPU, f32.
    act = jnp.maximum(x.astype(jnp.float32) * scale_ref[...] + bias_ref[...], 0.0)

    # Fused concat: first C output channels are the original input.
    o_ref[0, 0:C, :] = x.astype(o_ref.dtype)

    # Flat zero-bordered activation, interior 128-lane aligned:
    #   [ zeros(PAD) | act (HW) | zeros(PAD) ]   per channel.
    # PAD and HW are multiples of 128 -> all three stores are aligned dense stores.
    # Borders are re-zeroed every grid step (scratch is per-core; do NOT gate on
    # program_id==0, which breaks under megacore sharding of the batch axis).
    buf_ref[:, 0:PAD] = jnp.zeros((C, PAD), jnp.float32)
    buf_ref[:, PAD:PAD + HW] = act
    buf_ref[:, PAD + HW:PAD + HW + PAD] = jnp.zeros((C, PAD), jnp.float32)

    # Column-validity masks: a flattened +/-1 lane shift bleeds across image rows,
    # so taps with dx != 0 must zero the first / last column of each image row.
    lane = jax.lax.broadcasted_iota(jnp.int32, (1, HW), 1)
    wcol = lane % W
    ok_left = wcol >= 1                # valid output columns for dx = -1 taps
    ok_right = wcol <= W - 2           # valid output columns for dx = +1 taps

    # im2col: 9 constant-offset lane windows of the flat-padded activation.
    # Row out-of-range reads land in the zero borders; column bleed is masked.
    for tap in range(9):               # static, fully unrolled
        dy = tap // 3 - 1
        dx = tap % 3 - 1
        start = PAD + dy * W + dx      # static, >= 0 since PAD >= W+1
        slab = buf_ref[:, start:start + HW]                   # (C, HW)
        if dx == -1:
            slab = jnp.where(ok_left, slab, 0.0)
        elif dx == 1:
            slab = jnp.where(ok_right, slab, 0.0)
        col_ref[tap * C:(tap + 1) * C, :] = slab

    # Single lane-dense MXU contraction: (G, 9C) @ (9C, HW) -> (G, HW).
    out = jnp.dot(w_ref[...], col_ref[...], preferred_element_type=jnp.float32)
    o_ref[0, C:C + G, :] = out.astype(o_ref.dtype)


def single_layer_forward(x_nchw, gamma, beta, conv_w, eps=1e-5):
    """Forward of SingleLayer: cat([x, conv3x3(relu(bn(x)))], dim=1), NCHW in/out."""
    N, C, H, W = x_nchw.shape
    G = conv_w.shape[0]
    HW = H * W
    PAD = ((W + 1 + 127) // 128) * 128          # 128-aligned halo width (>= W+1)

    # Glue: training-mode BatchNorm statistics (batch stats, biased variance),
    # reduced in plain JAX (cross-batch reduction) and fused into per-channel
    # scale/bias for the kernel.
    mean = jnp.mean(x_nchw, axis=(0, 2, 3))
    var = jnp.mean(jnp.square(x_nchw - mean[None, :, None, None]), axis=(0, 2, 3))
    scale = (gamma / jnp.sqrt(var + eps)).astype(jnp.float32)
    bias = (beta - mean * scale).astype(jnp.float32)

    # Free reshape (merge minor dims): NCHW stays NCHW, spatial goes to lanes.
    x_flat = x_nchw.reshape(N, C, HW)
    # Weight (G, C, 3, 3) -> (G, 3, 3, C) -> (G, 9C): K index = (kh*3+kw)*C + c.
    w_mat = jnp.transpose(conv_w, (0, 2, 3, 1)).reshape(G, 9 * C).astype(jnp.float32)

    kernel = functools.partial(_single_layer_kernel, H=H, W=W, PAD=PAD)

    out_flat = pl.pallas_call(
        kernel,
        out_shape=jax.ShapeDtypeStruct((N, C + G, HW), x_nchw.dtype),
        grid_spec=pltpu.PrefetchScalarGridSpec(
            num_scalar_prefetch=0,
            grid=(N,),
            in_specs=[
                pl.BlockSpec((1, C, HW), lambda b: (b, 0, 0)),
                pl.BlockSpec((C, 1), lambda b: (0, 0)),
                pl.BlockSpec((C, 1), lambda b: (0, 0)),
                pl.BlockSpec((G, 9 * C), lambda b: (0, 0)),
            ],
            out_specs=pl.BlockSpec((1, C + G, HW), lambda b: (b, 0, 0)),
            scratch_shapes=[
                pltpu.VMEM((C, HW + 2 * PAD), jnp.float32),     # flat-padded act
                pltpu.VMEM((9 * C, HW), jnp.float32),           # im2col
            ],
        ),
        compiler_params=pltpu.CompilerParams(
            dimension_semantics=("parallel",)),
    )(x_flat, scale.reshape(C, 1), bias.reshape(C, 1), w_mat)

    # Free reshape back to NCHW; concat was fused inside the kernel.
    return out_flat.reshape(N, C + G, H, W)


def _reference(x, gamma, beta, w, eps=1e-5):
    # Pure-JAX reference (training-mode BN, cross-correlation conv, channel concat).
    mean = jnp.mean(x, axis=(0, 2, 3), keepdims=True)
    var = jnp.mean((x - mean) ** 2, axis=(0, 2, 3), keepdims=True)
    xh = (x - mean) / jnp.sqrt(var + eps)
    xh = xh * gamma[None, :, None, None] + beta[None, :, None, None]
    a = jnp.maximum(xh, 0.0)
    out = jax.lax.conv_general_dilated(
        a, w, window_strides=(1, 1), padding=((1, 1), (1, 1)),
        dimension_numbers=("NCHW", "OIHW", "NCHW"))
    return jnp.concatenate([x, out], axis=1)


if __name__ == "__main__":
    N, C, H, W = 2, 4, 16, 16      # nChannels = 4
    G = 8                          # growthRate = 8

    key = jax.random.PRNGKey(0)
    kx, kw = jax.random.split(key)

    x = jax.random.normal(kx, (N, C, H, W), dtype=jnp.float32)

    # Deterministic parameter init (same shapes as the nn.Module):
    gamma = jnp.ones((C,), jnp.float32)          # BatchNorm2d.weight
    beta = jnp.zeros((C,), jnp.float32)          # BatchNorm2d.bias
    # Conv2d(C, G, 3, padding=1, bias=False).weight: (G, C, 3, 3).
    conv_w = jax.random.normal(kw, (G, C, 3, 3), dtype=jnp.float32) * \
        jnp.sqrt(2.0 / (3 * 3 * G))

    out = single_layer_forward(x, gamma, beta, conv_w)
    out = jax.block_until_ready(out)

    assert out.shape == (N, C + G, H, W), out.shape

    ref = _reference(x, gamma, beta, conv_w)
    assert jnp.allclose(out, ref, atol=1e-4, rtol=1e-4), \
        float(jnp.max(jnp.abs(out - ref)))

    print("KERNEL_OK")
</pallas_src>

<mosaic_0001>
module attributes {stable_mosaic.version = 11 : i64} {
  func.func @_single_layer_kernel(%arg0: i32, %arg1: memref<1x4x256xf32, #tpu.memory_space<vmem>>, %arg2: memref<4x1xf32, #tpu.memory_space<vmem>>, %arg3: memref<4x1xf32, #tpu.memory_space<vmem>>, %arg4: memref<8x36xf32, #tpu.memory_space<vmem>>, %arg5: memref<1x12x256xf32, #tpu.memory_space<vmem>>, %arg6: memref<4x512xf32, #tpu.memory_space<vmem>>, %arg7: memref<36x256xf32, #tpu.memory_space<vmem>>) attributes {dimension_semantics = [#tpu.dimension_semantics<parallel>], iteration_bounds = array<i64: 2>, scalar_prefetch = 0 : i64, scratch_operands = 2 : i64, tpu.core_type = #tpu.core_type<tc>, window_params = [{transform_indices = @transform_0, window_bounds = array<i64: 1, 4, 256>}, {pipeline_mode = #tpu.pipeline_mode<synchronous>, transform_indices = @transform_1, window_bounds = array<i64: 4, 1>}, {pipeline_mode = #tpu.pipeline_mode<synchronous>, transform_indices = @transform_2, window_bounds = array<i64: 4, 1>}, {pipeline_mode = #tpu.pipeline_mode<synchronous>, transform_indices = @transform_3, window_bounds = array<i64: 8, 36>}, {transform_indices = @transform_4, window_bounds = array<i64: 1, 12, 256>}]} {
    %c0 = arith.constant 0 : index
    %c0_0 = arith.constant 0 : index
    %c0_1 = arith.constant 0 : index
    %0 = vector.load %arg1[%c0, %c0_0, %c0_1] : memref<1x4x256xf32, #tpu.memory_space<vmem>>, vector<1x4x256xf32>
    %1 = vector.shape_cast %0 : vector<1x4x256xf32> to vector<4x256xf32>
    %c0_2 = arith.constant 0 : index
    %c0_3 = arith.constant 0 : index
    %2 = vector.load %arg2[%c0_2, %c0_3] : memref<4x1xf32, #tpu.memory_space<vmem>>, vector<4x1xf32>
    %3 = vector.broadcast %2 : vector<4x1xf32> to vector<4x256xf32>
    %4 = arith.mulf %1, %3 : vector<4x256xf32>
    %c0_4 = arith.constant 0 : index
    %c0_5 = arith.constant 0 : index
    %5 = vector.load %arg3[%c0_4, %c0_5] : memref<4x1xf32, #tpu.memory_space<vmem>>, vector<4x1xf32>
    %6 = vector.broadcast %5 : vector<4x1xf32> to vector<4x256xf32>
    %7 = arith.addf %4, %6 : vector<4x256xf32>
    %cst = arith.constant 0.000000e+00 : f32
    %8 = vector.broadcast %cst : f32 to vector<4x256xf32>
    %9 = arith.maximumf %7, %8 : vector<4x256xf32>
    %c0_6 = arith.constant 0 : index
    %c0_7 = arith.constant 0 : index
    %c0_8 = arith.constant 0 : index
    %10 = vector.load %arg5[%c0_6, %c0_7, %c0_8] : memref<1x12x256xf32, #tpu.memory_space<vmem>>, vector<1x4x256xf32>
    %11 = vector.shape_cast %10 : vector<1x4x256xf32> to vector<4x256xf32>
    %12 = vector.shape_cast %1 : vector<4x256xf32> to vector<1x4x256xf32>
    tpu.vector_store %arg5[%c0_6, %c0_7, %c0_8], %12 {strides = array<i32>} : memref<1x12x256xf32, #tpu.memory_space<vmem>>, vector<1x4x256xf32>,
    %cst_9 = arith.constant 0.000000e+00 : f32
    %13 = vector.broadcast %cst_9 : f32 to vector<4x128xf32>
    %c0_10 = arith.constant 0 : index
    %c0_11 = arith.constant 0 : index
    %14 = vector.load %arg6[%c0_10, %c0_11] : memref<4x512xf32, #tpu.memory_space<vmem>>, vector<4x128xf32>
    tpu.vector_store %arg6[%c0_10, %c0_11], %13 {strides = array<i32>} : memref<4x512xf32, #tpu.memory_space<vmem>>, vector<4x128xf32>,
    %c0_12 = arith.constant 0 : index
    %c128 = arith.constant 128 : index
    %15 = vector.load %arg6[%c0_12, %c128] : memref<4x512xf32, #tpu.memory_space<vmem>>, vector<4x256xf32>
    tpu.vector_store %arg6[%c0_12, %c128], %9 {strides = array<i32>} : memref<4x512xf32, #tpu.memory_space<vmem>>, vector<4x256xf32>,
    %cst_13 = arith.constant 0.000000e+00 : f32
    %16 = vector.broadcast %cst_13 : f32 to vector<4x128xf32>
    %c0_14 = arith.constant 0 : index
    %c384 = arith.constant 384 : index
    %17 = vector.load %arg6[%c0_14, %c384] : memref<4x512xf32, #tpu.memory_space<vmem>>, vector<4x128xf32>
    tpu.vector_store %arg6[%c0_14, %c384], %16 {strides = array<i32>} : memref<4x512xf32, #tpu.memory_space<vmem>>, vector<4x128xf32>,
    %18 = tpu.iota {dimensions = array<i32: 1>} : vector<1x256xi32>
    %c16_i32 = arith.constant 16 : i32
    %c0_i32 = arith.constant 0 : i32
    %19 = arith.cmpi eq, %c16_i32, %c0_i32 : i32
    %c1_i32 = arith.constant 1 : i32
    %20 = arith.select %19, %c1_i32, %c16_i32 : i32
    %21 = vector.broadcast %20 : i32 to vector<1x256xi32>
    %22 = arith.remsi %18, %21 : vector<1x256xi32>
    %c0_i32_15 = arith.constant 0 : i32
    %23 = vector.broadcast %c0_i32_15 : i32 to vector<1x256xi32>
    %24 = arith.cmpi ne, %22, %23 : vector<1x256xi32>
    %c0_i32_16 = arith.constant 0 : i32
    %25 = vector.broadcast %c0_i32_16 : i32 to vector<1x256xi32>
    %26 = arith.cmpi slt, %22, %25 : vector<1x256xi32>
    %c0_i32_17 = arith.constant 0 : i32
    %27 = arith.cmpi slt, %20, %c0_i32_17 : i32
    %28 = vector.broadcast %27 : i1 to vector<1x256xi1>
    %29 = vector.broadcast %28 : vector<1x256xi1> to vector<1x256xi1>
    %30 = arith.xori %26, %29 : vector<1x256xi1>
    %31 = arith.andi %30, %24 : vector<1x256xi1>
    %32 = vector.broadcast %20 : i32 to vector<1x256xi32>
    %33 = arith.addi %22, %32 : vector<1x256xi32>
    %34 = arith.select %31, %33, %22 : vector<1x256xi1>, vector<1x256xi32>
    %c1_i32_18 = arith.constant 1 : i32
    %35 = vector.broadcast %c1_i32_18 : i32 to vector<1x256xi32>
    %36 = arith.cmpi sge, %34, %35 : vector<1x256xi32>
    %c14_i32 = arith.constant 14 : i32
    %37 = vector.broadcast %c14_i32 : i32 to vector<1x256xi32>
    %38 = arith.cmpi sle, %34, %37 : vector<1x256xi32>
    %c0_19 = arith.constant 0 : index
    %c111 = arith.constant 111 : index
    %39 = vector.load %arg6[%c0_19, %c111] : memref<4x512xf32, #tpu.memory_space<vmem>>, vector<4x256xf32>
    %cst_20 = arith.constant 0.000000e+00 : f32
    %40 = vector.shape_cast %36 : vector<1x256xi1> to vector<1x256xi1>
    %41 = vector.broadcast %40 : vector<1x256xi1> to vector<4x256xi1>
    %42 = vector.broadcast %cst_20 : f32 to vector<4x256xf32>
    %43 = arith.select %41, %39, %42 : vector<4x256xi1>, vector<4x256xf32>
    %c0_21 = arith.constant 0 : index
    %c0_22 = arith.constant 0 : index
    %44 = vector.load %arg7[%c0_21, %c0_22] : memref<36x256xf32, #tpu.memory_space<vmem>>, vector<4x256xf32>
    tpu.vector_store %arg7[%c0_21, %c0_22], %43 {strides = array<i32>} : memref<36x256xf32, #tpu.memory_space<vmem>>, vector<4x256xf32>,
    %c0_23 = arith.constant 0 : index
    %c112 = arith.constant 112 : index
    %45 = vector.load %arg6[%c0_23, %c112] : memref<4x512xf32, #tpu.memory_space<vmem>>, vector<4x256xf32>
    %c4 = arith.constant 4 : index
    %c0_24 = arith.constant 0 : index
    %46 = vector.load %arg7[%c4, %c0_24] : memref<36x256xf32, #tpu.memory_space<vmem>>, vector<4x256xf32>
    tpu.vector_store %arg7[%c4, %c0_24], %45 {strides = array<i32>} : memref<36x256xf32, #tpu.memory_space<vmem>>, vector<4x256xf32>,
    %c0_25 = arith.constant 0 : index
    %c113 = arith.constant 113 : index
    %47 = vector.load %arg6[%c0_25, %c113] : memref<4x512xf32, #tpu.memory_space<vmem>>, vector<4x256xf32>
    %cst_26 = arith.constant 0.000000e+00 : f32
    %48 = vector.shape_cast %38 : vector<1x256xi1> to vector<1x256xi1>
    %49 = vector.broadcast %48 : vector<1x256xi1> to vector<4x256xi1>
    %50 = vector.broadcast %cst_26 : f32 to vector<4x256xf32>
    %51 = arith.select %49, %47, %50 : vector<4x256xi1>, vector<4x256xf32>
    %c8 = arith.constant 8 : index
    %c0_27 = arith.constant 0 : index
    %52 = vector.load %arg7[%c8, %c0_27] : memref<36x256xf32, #tpu.memory_space<vmem>>, vector<4x256xf32>
    tpu.vector_store %arg7[%c8, %c0_27], %51 {strides = array<i32>} : memref<36x256xf32, #tpu.memory_space<vmem>>, vector<4x256xf32>,
    %c0_28 = arith.constant 0 : index
    %c127 = arith.constant 127 : index
    %53 = vector.load %arg6[%c0_28, %c127] : memref<4x512xf32, #tpu.memory_space<vmem>>, vector<4x256xf32>
    %cst_29 = arith.constant 0.000000e+00 : f32
    %54 = vector.shape_cast %36 : vector<1x256xi1> to vector<1x256xi1>
    %55 = vector.broadcast %54 : vector<1x256xi1> to vector<4x256xi1>
    %56 = vector.broadcast %cst_29 : f32 to vector<4x256xf32>
    %57 = arith.select %55, %53, %56 : vector<4x256xi1>, vector<4x256xf32>
    %c12 = arith.constant 12 : index
    %c0_30 = arith.constant 0 : index
    %58 = vector.load %arg7[%c12, %c0_30] : memref<36x256xf32, #tpu.memory_space<vmem>>, vector<4x256xf32>
    tpu.vector_store %arg7[%c12, %c0_30], %57 {strides = array<i32>} : memref<36x256xf32, #tpu.memory_space<vmem>>, vector<4x256xf32>,
    %c0_31 = arith.constant 0 : index
    %c128_32 = arith.constant 128 : index
    %59 = vector.load %arg6[%c0_31, %c128_32] : memref<4x512xf32, #tpu.memory_space<vmem>>, vector<4x256xf32>
    %c16 = arith.constant 16 : index
    %c0_33 = arith.constant 0 : index
    %60 = vector.load %arg7[%c16, %c0_33] : memref<36x256xf32, #tpu.memory_space<vmem>>, vector<4x256xf32>
    tpu.vector_store %arg7[%c16, %c0_33], %59 {strides = array<i32>} : memref<36x256xf32, #tpu.memory_space<vmem>>, vector<4x256xf32>,
    %c0_34 = arith.constant 0 : index
    %c129 = arith.constant 129 : index
    %61 = vector.load %arg6[%c0_34, %c129] : memref<4x512xf32, #tpu.memory_space<vmem>>, vector<4x256xf32>
    %cst_35 = arith.constant 0.000000e+00 : f32
    %62 = vector.shape_cast %38 : vector<1x256xi1> to vector<1x256xi1>
    %63 = vector.broadcast %62 : vector<1x256xi1> to vector<4x256xi1>
    %64 = vector.broadcast %cst_35 : f32 to vector<4x256xf32>
    %65 = arith.select %63, %61, %64 : vector<4x256xi1>, vector<4x256xf32>
    %c20 = arith.constant 20 : index
    %c0_36 = arith.constant 0 : index
    %66 = vector.load %arg7[%c20, %c0_36] : memref<36x256xf32, #tpu.memory_space<vmem>>, vector<4x256xf32>
    tpu.vector_store %arg7[%c20, %c0_36], %65 {strides = array<i32>} : memref<36x256xf32, #tpu.memory_space<vmem>>, vector<4x256xf32>,
    %c0_37 = arith.constant 0 : index
    %c143 = arith.constant 143 : index
    %67 = vector.load %arg6[%c0_37, %c143] : memref<4x512xf32, #tpu.memory_space<vmem>>, vector<4x256xf32>
    %cst_38 = arith.constant 0.000000e+00 : f32
    %68 = vector.shape_cast %36 : vector<1x256xi1> to vector<1x256xi1>
    %69 = vector.broadcast %68 : vector<1x256xi1> to vector<4x256xi1>
    %70 = vector.broadcast %cst_38 : f32 to vector<4x256xf32>
    %71 = arith.select %69, %67, %70 : vector<4x256xi1>, vector<4x256xf32>
    %c24 = arith.constant 24 : index
    %c0_39 = arith.constant 0 : index
    %72 = vector.load %arg7[%c24, %c0_39] : memref<36x256xf32, #tpu.memory_space<vmem>>, vector<4x256xf32>
    tpu.vector_store %arg7[%c24, %c0_39], %71 {strides = array<i32>} : memref<36x256xf32, #tpu.memory_space<vmem>>, vector<4x256xf32>,
    %c0_40 = arith.constant 0 : index
    %c144 = arith.constant 144 : index
    %73 = vector.load %arg6[%c0_40, %c144] : memref<4x512xf32, #tpu.memory_space<vmem>>, vector<4x256xf32>
    %c28 = arith.constant 28 : index
    %c0_41 = arith.constant 0 : index
    %74 = vector.load %arg7[%c28, %c0_41] : memref<36x256xf32, #tpu.memory_space<vmem>>, vector<4x256xf32>
    tpu.vector_store %arg7[%c28, %c0_41], %73 {strides = array<i32>} : memref<36x256xf32, #tpu.memory_space<vmem>>, vector<4x256xf32>,
    %c0_42 = arith.constant 0 : index
    %c145 = arith.constant 145 : index
    %75 = vector.load %arg6[%c0_42, %c145] : memref<4x512xf32, #tpu.memory_space<vmem>>, vector<4x256xf32>
    %cst_43 = arith.constant 0.000000e+00 : f32
    %76 = vector.shape_cast %38 : vector<1x256xi1> to vector<1x256xi1>
    %77 = vector.broadcast %76 : vector<1x256xi1> to vector<4x256xi1>
    %78 = vector.broadcast %cst_43 : f32 to vector<4x256xf32>
    %79 = arith.select %77, %75, %78 : vector<4x256xi1>, vector<4x256xf32>
    %c32 = arith.constant 32 : index
    %c0_44 = arith.constant 0 : index
    %80 = vector.load %arg7[%c32, %c0_44] : memref<36x256xf32, #tpu.memory_space<vmem>>, vector<4x256xf32>
    tpu.vector_store %arg7[%c32, %c0_44], %79 {strides = array<i32>} : memref<36x256xf32, #tpu.memory_space<vmem>>, vector<4x256xf32>,
    %c0_45 = arith.constant 0 : index
    %c0_46 = arith.constant 0 : index
    %81 = vector.load %arg4[%c0_45, %c0_46] : memref<8x36xf32, #tpu.memory_space<vmem>>, vector<8x36xf32>
    %c0_47 = arith.constant 0 : index
    %c0_48 = arith.constant 0 : index
    %82 = vector.load %arg7[%c0_47, %c0_48] : memref<36x256xf32, #tpu.memory_space<vmem>>, vector<36x256xf32>
    %cst_49 = arith.constant dense<0.000000e+00> : vector<8x256xf32>
    %83 = tpu.matmul %81, %82, %cst_49 {dimension_numbers = #tpu.dot_dimension_numbers<[1], [0], [0], [1], [0, 0, 1, 1], [], []>} : vector<8x36xf32>, vector<36x256xf32>, vector<8x256xf32> -> vector<8x256xf32>
    %c0_50 = arith.constant 0 : index
    %c4_51 = arith.constant 4 : index
    %c0_52 = arith.constant 0 : index
    %84 = vector.load %arg5[%c0_50, %c4_51, %c0_52] : memref<1x12x256xf32, #tpu.memory_space<vmem>>, vector<1x8x256xf32>
    %85 = vector.shape_cast %84 : vector<1x8x256xf32> to vector<8x256xf32>
    %86 = vector.shape_cast %83 : vector<8x256xf32> to vector<1x8x256xf32>
    tpu.vector_store %arg5[%c0_50, %c4_51, %c0_52], %86 {strides = array<i32>} : memref<1x12x256xf32, #tpu.memory_space<vmem>>, vector<1x8x256xf32>,
    return
  }
  func.func @transform_0(%arg0: i32) -> (i32, i32, i32) {
    %c0_i32 = arith.constant 0 : i32
    %c0_i32_0 = arith.constant 0 : i32
    %c0_i32_1 = arith.constant 0 : i32
    return %arg0, %c0_i32, %c0_i32_0 : i32, i32, i32
  }
  func.func @transform_1(%arg0: i32) -> (i32, i32) {
    %c0_i32 = arith.constant 0 : i32
    %c0_i32_0 = arith.constant 0 : i32
    %c0_i32_1 = arith.constant 0 : i32
    return %c0_i32, %c0_i32_0 : i32, i32
  }
  func.func @transform_2(%arg0: i32) -> (i32, i32) {
    %c0_i32 = arith.constant 0 : i32
    %c0_i32_0 = arith.constant 0 : i32
    %c0_i32_1 = arith.constant 0 : i32
    return %c0_i32, %c0_i32_0 : i32, i32
  }
  func.func @transform_3(%arg0: i32) -> (i32, i32) {
    %c0_i32 = arith.constant 0 : i32
    %c0_i32_0 = arith.constant 0 : i32
    %c0_i32_1 = arith.constant 0 : i32
    return %c0_i32, %c0_i32_0 : i32, i32
  }
  func.func @transform_4(%arg0: i32) -> (i32, i32, i32) {
    %c0_i32 = arith.constant 0 : i32
    %c0_i32_0 = arith.constant 0 : i32
    %c0_i32_1 = arith.constant 0 : i32
    return %arg0, %c0_i32, %c0_i32_0 : i32, i32, i32
  }
}

</mosaic_0001>

<bundles_post_ra>
// kernel: tpu_custom_call.1
= control target key start
LH: loop header
LB: loop body
LE: loop exit
PB: predicated region body
PF: predicated region fallthrough
CT: control target
= control target key end

     0   :  { %9 = vsyncpa [#allocation5], 0  ;;  %s1000_s0 = inlined_call_operand.hbm [shape: f32[2,4,256], index: 0, kind: input, shape index: {}]   ;;  %s1001_s1 = inlined_call_operand.vmem [shape: f32[4,1], index: 1, kind: input, shape index: {}]   ;;  %s1002_s2 = inlined_call_operand.vmem [shape: f32[4,1], index: 2, kind: input, shape index: {}]   ;;  %s1003_s3 = inlined_call_operand.vmem [shape: f32[8,36], index: 3, kind: input, shape index: {}]   ;;  %s1004_s4 = inlined_call_operand.vmem [shape: f32[2,12,256], index: 4, kind: output, shape index: {}]  }
   0x1   :  { %11 = vsyncpa [#allocation5 + $0x1], 0  ;;  %s813_s15 = smov 0   ;;  %s815_s16 = smov 0  }
   0x2   :  { %s817_s17 = smov 0   ;;  %s819_s18 = smov 0  }
   0x3 LB: > { %s832_s19 = sadd.s32 4294967295, %s774_s18   ;;  %s835_s20 = sadd.s32 1, %s774_s18   ;;  %s774_s18 = sphi %s819_s18, %s1022_s18   ;;  %s770_s17 = sphi %s817_s17, %s1021_s17   ;;  %s766_s16 = sphi %s815_s16, %s1020_s16   ;;  %s762_s15 = sphi %s813_s15, %s1019_s15  }
   0x4   : > { %s21_s21 = ssub.s32 %s774_s18, %s835_s20  ;;  %s24_s22 = sadd.s32 1, %s770_s17 }
   0x5   : > { %p22_p0 = scmp.eq.s32.totalorder %s21_s21, 0  ;;  %p31_p1 = scmp.ne.s32.totalorder %s770_s17, %s766_s16 }
   0x6   : > { %p32_p2 = scmp.eq.s32.totalorder %s774_s18, 0  ;;  %p37_p3 = scmp.ne.s32.totalorder %s766_s16, %s762_s15 }
   0x7   : > { %s845_s23 = scalar_select %p22_p0, %s770_s17, %s24_s22  }
   0x8   : > { %p33_p4 = por %p32_p2, %p31_p1  ;;  %p38_p5 = scmp.eq.s32.totalorder %s832_s19, 0 }
   0x9   : > { %p662_p6 = scmp.lt.s32.totalorder %s774_s18, 2  ;;  %s159_s25 = sand.u32 1, %s770_s17  }
   0xa   : > { %p849_p7 = por %p38_p5, %p37_p3  ;;  %s642_s26 = sshll.u32 %s159_s25, 3 }
   0xb   : > { %s654_s27 = sshll.u32 %s774_s18, 7  ;;  %s163_s5 = scalar_lea.vmem [#allocation4], %s642_s26 }
   0xc   : > { %s1006_s24 = scalar_select %p849_p7, 1, 0 }
   0xd   : > { %s858_s30 = scalar_lea.hbm %s1000_s0, %s654_s27  ;;  %s171_s6 = sshll.u32 %s163_s5, 4  ;;  %s860_s6 = int_to_ptr.vmem [resolvable:$true] %s171_s6 }
   0xe   : > { %p862_p8 = pnand %p662_p6, %p33_p4  ;;  %s160_s8 = scalar_lea.sflag [#allocation5], %s159_s25 }
   0xf   : > { %s712_s9 = scalar_lea.hbm %s858_s30, 128  ;;  %s717_s12 = scalar_lea.hbm %s1000_s0, 256 }
  0x10   : > { %p713_p11 = scmp.ne.s32.totalorder %s858_s30, %s712_s9  ;;  %p714_p12 = pneg %p862_p8 }
  0x11   : > { %p718_p1 = scmp.lt.s32.totalorder %s858_s30, %s1000_s0  ;;  %p719_p2 = scmp.lt.s32.totalorder %s717_s12, %s712_s9 }
  0x12   : > { %p715_p13 = pnand %p714_p12, %p713_p11 }
  0x13   : > { %p720_p3 = por %p719_p2, %p718_p1 }
  0x14   : > { %p716_p0 = pneg %p715_p13 }
  0x16   : > { %p721_p4 = pnand %p720_p3, %p716_p0 }
  0x18   : > { %724 = shalt.err (!%p721_p4)
}
  0x19   : > { %s725_s15 = scalar_lea.vmem %s860_s6, 128  ;;  %s776_s21 = smov [#allocation4]  }
  0x1a   : > { %p726_p5 = scmp.ne.s32.totalorder %s860_s6, %s725_s15  ;;  %s730_s22 = sshll.u32 %s776_s21, 4  ;;  %s731_s22 = int_to_ptr.vmem [resolvable:$false] %s730_s22 }
  0x1b   : > { %s732_s25 = scalar_lea.vmem %s731_s22, 256  ;;  %p733_p13 = scmp.lt.s32.totalorder %s860_s6, %s731_s22 }
  0x1c   : > { %p728_p6 = pnand %p726_p5, %p714_p12  ;;  %p734_p9 = scmp.lt.s32.totalorder %s732_s25, %s725_s15 }
  0x1e   : > { %p729_p11 = pneg %p728_p6  ;;  %p735_p10 = por %p734_p9, %p733_p13 }
  0x20   : > { %p736_p7 = pnand %p735_p10, %p729_p11 }
  0x22   : > { %739 = shalt.err (!%p736_p7)
}
  0x23   : > { %661 = dma.hbm_to_vmem [thread:$0]  (!%p862_p8), %s858_s30, 128, %s860_s6, %s160_s8  }
  0x24   : > { %p1008_p0 = scmp.lt.s32.totalorder %s774_s18, 3  ;;  %p1009_p1 = scmp.ge.s32.totalorder %s774_s18, 1 }
  0x26   : > { %p177_p12 = pnand %p1009_p1, %p1008_p0 }
  0x27   : > { %s182_s26 = sand.u32 (!%p177_p12), 1, %s766_s16   ;;  %p1010_p9 = scmp.ne.s32.totalorder (!%p177_p12), %s1006_s24, 0 }
  0x28   : > { %180 = sbr.rel (%p177_p12) target bundleno = 549 (0x225), region = 36  ;;  %s646_s27 = sshll.u32 (!%p177_p12), %s182_s26, 3 }
  0x29   : > { %s183_s28 = scalar_lea.sflag (!%p177_p12), [#allocation5], %s182_s26  ;;  %s186_s29 = scalar_lea.vmem (!%p177_p12), [#allocation4], %s646_s27 }
  0x2d   : > { %757 = dma.done.wait (%p1010_p9), %s183_s28, 128  }
  0x2e   : > { %759 = vsyncadd (%p1010_p9), %s183_s28, 4294967168  ;;  %p211_p7 = scmp.lt.s32.totalorder %s832_s19, 1  ;;  %v777_v0 = vmov 0   ;;  %v778_v1 = vmov 0.0   ;;  %v217_v2 = vld [vmem:[%s1001_s1] sm:$0xf]  ;;  %v225_v12 = vlaneseq }
  0x2f   : > { %706 = vset.pattern.permute.xlu0 %v777_v0  ;;  %253 = vst [vmem:[#allocation2 + $0xc] sm:$0xf] %v778_v1  ;;  %251 = vst [vmem:[#allocation2] sm:$0xf] %v778_v1  ;;  %555 = vmatprep.mubr.f32.mxu0 %v778_v1  ;;  %v216_v3 = vld [vmem:[%s186_s29] sm:$0xff]  ;;  %s780_s10 = smov 127  }
  0x30   : > { %s1024_s19 = smov (!%p211_p7, %s832_s19), 1  ;;  %220 = vperm.xlu0 %706, %v217_v2   ;;  %v247_v4 = vcombine.high %v216_v3, %v216_v3  ;;  %v231_v5 = vld [vmem:[%s1002_s2] sm:$0xf]  ;;  %s781_s11 = smov 113   ;;  %v783_v10 = vmov 839922192  }
  0x31   : > { %s655_s18 = sshll.u32 %s1024_s19, 5  ;;  %s779_s19 = smov 111   ;;  %v223_v11 = vunpack.c.l.s4 %v783_v10  ;;  %v226_v14 = vshrl.u32 %v225_v12, 7  ;;  %vm442_vm0 = vcmask 916480   ;;  %v255_v41 = vand.u32 127, %v225_v12 }
  0x32   : > { %s903_s24 = scalar_lea.vmem %s1004_s4, %s655_s18  ;;  %s782_s12 = smov 112   ;;  %vm460_vm1 = vcmask 908288   ;;  %vm395_vm4 = vcmask 1039360   ;;  %vm300_vm5 = vcmask 138240   ;;  %vm421_vm8 = vcmask 924672  }
  0x33   : > { %249 = vst [vmem:[%s903_s24] sm:$0xf] %v216_v3  ;;  %250 = vst [vmem:[%s903_s24 + $0x8] sm:$0xf] %v247_v4  ;;  %v224_v13 = vunpack.c.0.s8 %v223_v11  ;;  %s784_s13 = smov 1   ;;  %s785_s14 = smov 15   ;;  %v256_v44 = vadd.s32 128, %v255_v41 }
  0x34   : > { %234 = vperm.xlu0 %706, %v231_v5   ;;  %s786_s15 = smov 17   ;;  %s787_s21 = smov 16   ;;  %v261_v47 = vand.u32 15, %v255_v41  ;;  %vm321_vm9 = vcmask 130048   ;;  %vm484_vm10 = vcmask 1043456   ;;  %vm363_vm11 = vcmask 7168  }
  0x35   : > { %v227_v15 = vsub.s32 %v224_v13, %v226_v14  ;;  %v268_v48 = vand.u32 15, %v256_v44  ;;  %vm343_vm12 = vcmask 121856   ;;  %v469_v41 = vld [vmem:[%s1003_s3] sm:$0xff]  ;;  %vm480_vm13 = vcmask 293888  }
  0x36   : > { %v450_v6 = vld [vmem:[#allocation2 + $0xc] sm:$0xf]  ;;  %vm932_vm2 = vcmp.le.s32.totalorder %v261_v47, 14  ;;  %vm944_vm6 = vcmp.ge.s32.totalorder %v261_v47, 1 }
  0x37   : > { %458 = vrot.lane.b32.xlu1 %v450_v6, %s779_s19  ;;  %v385_v7 = vld [vmem:[#allocation2 + $0xc] sm:$0xf]  ;;  %vm936_vm3 = vcmp.le.s32.totalorder %v268_v48, 14  ;;  %vm948_vm7 = vcmp.ge.s32.totalorder %v268_v48, 1 }
  0x38   : > { %393 = vrot.lane.b32.xlu0 %v385_v7, %s780_s10  ;;  %v411_v8 = vld [vmem:[#allocation2 + $0xc] sm:$0xf] }
  0x39   : > { %v708_v9 = vld [vmem:[#allocation2 + $0xc] ss:$0 sps:$4 sm:$0xff]  }
  0x3c   : > { %419 = vrot.lane.b32.xlu0 %v411_v8, %s781_s11 }
  0x40   : > { %440 = vrot.lane.b32.xlu0 %v708_v9, %s782_s12 }
  0xa9   : > { %v459_v34 = vpop.permute.xlu1 %458 }
  0xab   : > { %v221_v16 = vpop.permute.xlu0 %220 }
  0xac   : > { %v228_v17 = vrot.slane %v221_v16, %v227_v15 }
  0xae   : > { %v230_v19 = vmul.f32 %v228_v17, %v216_v3 }
  0xaf   : > { %v235_v18 = vpop.permute.xlu0 %234 }
  0xb0   : > { %v242_v20 = vrot.slane %v235_v18, %v227_v15 }
  0xb2   : > { %v244_v21 = vadd.f32 %v242_v20, %v230_v19 }
  0xb3   : > { %v394_v32 = vpop.permute.xlu0 %393 }
  0xb4   : > { %v245_v22 = vmax.f32 %v244_v21, 0.0 }
  0xb6   : > { %252 = vst [vmem:[#allocation2 + $0x4] sm:$0xff] %v245_v22  ;;  %454 = vrot.lane.b32.xlu0 %v245_v22, %s779_s19  ;;  %v453_v23 = vcombine.high %v245_v22, %v245_v22  ;;  %389 = vrot.lane.b32.xlu1 %v245_v22, %s780_s10  ;;  %382 = vst [vmem:[#allocation3 + $0x48] sm:$0xf] %v245_v22  ;;  %v434_v30 = vcombine.low %v245_v22, %v245_v22 }
  0xb7   : > { %v420_v33 = vpop.permute.xlu0 %419 }
  0xb8   : > { %383 = vst [vmem:[#allocation3 + $0x28] sm:$0xf] %v453_v23 }
  0xba   : > { %415 = vrot.lane.b32.xlu0 %v245_v22, %s781_s11  ;;  %438 = vrot.lane.b32.xlu1 %v245_v22, %s782_s12 }
  0xbb   : > { %v441_v35 = vpop.permute.xlu0 %440 }
  0xbd   : > { %v353_v24 = vld [vmem:[#allocation2 + $0x8] sm:$0xf]  ;;  %v328_v25 = vld [vmem:[#allocation2] sm:$0xff] }
  0xbe   : > { %361 = vrot.lane.b32.xlu0 %v353_v24, %s784_s13  ;;  %337 = vrot.lane.b32.xlu1 %v328_v25, %s785_s14  ;;  %v286_v26 = vld [vmem:[#allocation2 + $0x8] sm:$0xf]  ;;  %v336_v28 = vcombine.high %v328_v25, %v328_v25  ;;  %v313_v31 = vcombine.low %v328_v25, %v328_v25 }
  0xbf   : > { %v329_v27 = vld [vmem:[#allocation2 + $0x8] sm:$0xf] }
  0xc0   : > { %v711_v29 = vld [vmem:[#allocation2 + $0x8] ss:$0 sps:$4 sm:$0xff]  }
  0xc2   : > { %357 = vrot.lane.b32.xlu0 %v328_v25, %s784_s13  ;;  %298 = vrot.lane.b32.xlu1 %v286_v26, %s786_s15 }
  0xc6   : > { %341 = vrot.lane.b32.xlu0 %v329_v27, %s785_s14  ;;  %317 = vrot.lane.b32.xlu1 %v328_v25, %s787_s21 }
  0xca   : > { %456 = vrot.lane.b32.xlu1 %v453_v23, %s779_s19  ;;  %294 = vrot.lane.b32.xlu0 %v328_v25, %s786_s15 }
  0xce   : > { %391 = vrot.lane.b32.xlu1 %v453_v23, %s780_s10  ;;  %296 = vrot.lane.b32.xlu0 %v336_v28, %s786_s15 }
  0xd2   : > { %417 = vrot.lane.b32.xlu1 %v453_v23, %s781_s11  ;;  %319 = vrot.lane.b32.xlu0 %v711_v29, %s787_s21 }
  0xd6   : > { %359 = vrot.lane.b32.xlu1 %v336_v28, %s784_s13 }
  0xda   : > { %436 = vrot.lane.b32.xlu1 %v434_v30, %s782_s12 }
  0xde   : > { %339 = vrot.lane.b32.xlu1 %v336_v28, %s785_s14 }
  0xe2   : > { %315 = vrot.lane.b32.xlu1 %v313_v31, %s787_s21 }
 0x128   : > { %v455_v36 = vpop.permute.xlu0 %454  ;;  %v390_v37 = vpop.permute.xlu1 %389 }
 0x12c   : > { %v416_v38 = vpop.permute.xlu0 %415  ;;  %v922_v39 = vpop.permute.xlu1 %438 }
 0x12d   : > { %v444_v40 = vsel %vm442_vm0, %v922_v39, %v441_v35 }
 0x12e   : > { %448 = vst [vmem:[#allocation3 + $0x20] sm:$0xf0] %v444_v40 }
 0x130   : > { %v362_v42 = vpop.permute.xlu0 %361  ;;  %v926_v43 = vpop.permute.xlu1 %337 }
 0x134   : > { %v358_v45 = vpop.permute.xlu0 %357  ;;  %v299_v46 = vpop.permute.xlu1 %298 }
 0x138   : > { %v928_v49 = vpop.permute.xlu0 %341  ;;  %v930_v50 = vpop.permute.xlu1 %317 }
 0x13c   : > { %v457_v53 = vpop.permute.xlu1 %456  ;;  %v295_v54 = vpop.permute.xlu0 %294 }
 0x13d   : > { %v461_v55 = vsel %vm460_vm1, %v455_v36, %v457_v53  ;;  %v462_v56 = vsel %vm460_vm1, %v457_v53, %v459_v34 }
 0x13e   : > { %v465_v57 = vsel %vm932_vm2, %v461_v55, 0.0  ;;  %v466_v58 = vsel %vm936_vm3, %v462_v56, 0.0 }
 0x13f   : > { %467 = vst [vmem:[#allocation3 + $0x40] sm:$0xf] %v465_v57  ;;  %468 = vst [vmem:[#allocation3 + $0x38] sm:$0xf] %v466_v58 }
 0x140   : > { %v392_v61 = vpop.permute.xlu1 %391  ;;  %v297_v62 = vpop.permute.xlu0 %296 }
 0x141   : > { %v396_v63 = vsel %vm395_vm4, %v390_v37, %v392_v61  ;;  %v397_v0 = vsel %vm395_vm4, %v392_v61, %v394_v32  ;;  %v301_v1 = vsel %vm300_vm5, %v295_v54, %v297_v62  ;;  %v302_v2 = vsel %vm300_vm5, %v297_v62, %v299_v46 }
 0x142   : > { %v400_v3 = vsel %vm932_vm2, %v396_v63, 0.0  ;;  %v401_v4 = vsel %vm936_vm3, %v397_v0, 0.0  ;;  %v305_v5 = vsel %vm944_vm6, %v301_v1, 0.0  ;;  %v306_v6 = vsel %vm948_vm7, %v302_v2, 0.0 }
 0x143   : > { %v404_v7 = vrot.slane %v400_v3, 4  ;;  %v405_v8 = vrot.slane %v401_v4, 4  ;;  %307 = vst [vmem:[#allocation3 + $0x30] sm:$0xf] %v305_v5  ;;  %308 = vst [vmem:[#allocation3] sm:$0xf] %v306_v6 }
 0x144   : > { %v418_v9 = vpop.permute.xlu1 %417  ;;  %v320_v10 = vpop.permute.xlu0 %319 }
 0x145   : > { %408 = vst [vmem:[#allocation3 + $0x48] sm:$0xf0] %v404_v7  ;;  %409 = vst [vmem:[#allocation3 + $0x28] sm:$0xf0] %v405_v8  ;;  %v422_v11 = vsel %vm421_vm8, %v416_v38, %v418_v9  ;;  %v423_v12 = vsel %vm421_vm8, %v418_v9, %v420_v33  ;;  %v323_v13 = vsel %vm321_vm9, %v930_v50, %v320_v10 }
 0x146   : > { %v426_v14 = vsel %vm944_vm6, %v422_v11, 0.0  ;;  %v427_v15 = vsel %vm948_vm7, %v423_v12, 0.0  ;;  %327 = vst [vmem:[#allocation3] sm:$0xf0] %v323_v13  ;;  %v479_v16 = vld [vmem:[#allocation3 + $0x38] sm:$0xf] }
 0x147   : > { %v478_v17 = vld [vmem:[#allocation3 + $0x40] sm:$0xf]  ;;  %428 = vst [vmem:[#allocation3 + $0x8] sm:$0xf] %v426_v14  ;;  %429 = vst [vmem:[#allocation3 + $0x20] sm:$0xf] %v427_v15  ;;  %649 = vmatprep.subr.msk.mxu0 %vm484_vm10, %v479_v16 }
 0x148   : > { %650 = vmatpush1.msk.msra.mxu0 %vm484_vm10, %v478_v17  ;;  %v360_v18 = vpop.permute.xlu1 %359 }
 0x149   : > { %v364_v19 = vsel %vm363_vm11, %v358_v45, %v360_v18  ;;  %v365_v20 = vsel %vm363_vm11, %v360_v18, %v362_v42 }
 0x14a   : > { %v368_v21 = vsel %vm944_vm6, %v364_v19, 0.0  ;;  %v369_v22 = vsel %vm948_vm7, %v365_v20, 0.0 }
 0x14b   : > { %v372_v23 = vrot.slane %v368_v21, 4  ;;  %v373_v24 = vrot.slane %v369_v22, 4 }
 0x14c   : > { %v437_v25 = vpop.permute.xlu1 %436  ;;  %v475_v36 = vld [vmem:[#allocation3 + $0x28] sm:$0xff] }
 0x14d   : > { %376 = vst [vmem:[#allocation3 + $0x18] sm:$0xf0] %v372_v23  ;;  %377 = vst [vmem:[#allocation3 + $0x10] sm:$0xf0] %v373_v24  ;;  %v443_v26 = vsel %vm442_vm0, %v437_v25, %v922_v39  ;;  %v474_v37 = vld [vmem:[#allocation3 + $0x48] sm:$0xff]  ;;  %v471_v40 = vld [vmem:[#allocation3] sm:$0xff] }
 0x14e   : > { %447 = vst [vmem:[#allocation3 + $0x8] sm:$0xf0] %v443_v26  ;;  %v477_v27 = vld [vmem:[#allocation3 + $0x20] sm:$0xff] }
 0x14f   : > { %515 = vmatprep.subr.mxu0 %v477_v27 }
 0x150   : > { %v340_v28 = vpop.permute.xlu1 %339 }
 0x151   : > { %v344_v29 = vsel %vm343_vm12, %v926_v43, %v340_v28  ;;  %v345_v30 = vsel %vm343_vm12, %v340_v28, %v928_v49 }
 0x152   : > { %v348_v31 = vsel %vm932_vm2, %v344_v29, 0.0  ;;  %v349_v32 = vsel %vm936_vm3, %v345_v30, 0.0 }
 0x153   : > { %350 = vst [vmem:[#allocation3 + $0x18] sm:$0xf] %v348_v31  ;;  %351 = vst [vmem:[#allocation3 + $0x10] sm:$0xf] %v349_v32 }
 0x154   : > { %v316_v33 = vpop.permute.xlu1 %315 }
 0x155   : > { %v322_v34 = vsel %vm321_vm9, %v316_v33, %v930_v50  ;;  %v476_v35 = vld [vmem:[#allocation3 + $0x8] sm:$0xff] }
 0x156   : > { %326 = vst [vmem:[#allocation3 + $0x30] sm:$0xf0] %v322_v34  ;;  %516 = vmatpush1.msra.mxu0 %v476_v35 }
 0x157   : > { %517 = vmatprep.subr.mxu0 %v475_v36 }
 0x158   : > { %518 = vmatpush1.msra.mxu0 %v474_v37 }
 0x15a   : > { %v473_v38 = vld [vmem:[#allocation3 + $0x10] sm:$0xff]  ;;  %v472_v39 = vld [vmem:[#allocation3 + $0x18] sm:$0xff] }
 0x15b   : > { %519 = vmatprep.subr.mxu0 %v473_v38 }
 0x15c   : > { %520 = vmatpush1.msra.mxu0 %v472_v39 }
 0x15d   : > { %521 = vmatprep.subr.mxu0 %v471_v40  ;;  %v470_v42 = vld [vmem:[#allocation3 + $0x30] sm:$0xff] }
 0x15e   : > { %522 = vmatpush1.msra.mxu0 %v470_v42 }
 0x15f   : > { %651 = vmatmul.mubr.msk.f32.vlgmr.msra.gmra.mxu0 %vm480_vm13, %v469_v41 }
 0x21f   : > { %v557_v43 = vpop.f32.mrf.mxu0 }
 0x220   : > { %v564_v44 = vrot.slane %v557_v43, 4 }
 0x221   : > { %v559_v45 = vpop.f32.mrf.mxu0 }
 0x222   : > { %568 = vst [vmem:[%s903_s24 + $0x10] ss:$-12 sps:$4 sm:$0xff] %v564_v44   ;;  %v565_v46 = vrot.slane %v559_v45, 4 }
 0x224   : > { %569 = vst [vmem:[%s903_s24 + $0x18] ss:$-12 sps:$4 sm:$0xff] %v565_v46  }
 0x225 PF: > { %p14_p8 = scmp.ge.s32.totalorder %s835_s20, 4   ;;  %s1019_s15 = smov %s766_s16 }
 0x226   : > { %s1020_s16 = smov %s770_s17  ;;  %s1021_s17 = smov %s845_s23 }
 0x227   : > { %s1022_s18 = smov %s835_s20  ;;  %16 = sbr.rel (!%p14_p8) target bundleno = 3 (0x3), region = 76 }
 0x22c   :  { %593 = vsyncpa [#allocation5], 1 }
 0x22d   :  { %595 = vsyncpa [#allocation5 + $0x1], 1 }

</bundles_post_ra>
